<compile_context>
chip_gen: v7x
topology: tpu7x:2x2x1
jax: 0.10.0
libtpu: 0.0.40
codegen_flags: <defaults>
</compile_context>

<pallas_src>
import functools

import jax
import jax.numpy as jnp
from jax.experimental import pallas as pl
from jax.experimental.pallas import tpu as pltpu


# ----------------------------- model config ---------------------------------
DIMS = (16, 32, 8)           # [in_dim, hid_dim, out_dim]
PATHWAYS = (1, 2, 1)         # only layer 1 is gated
N_CONTEXT = 2
PATHWAY_SIZES = tuple(d // p for d, p in zip(DIMS, PATHWAYS))
GATEABLE_LAYER = 1           # np.where(p != 1) -> [1]
DPAD = 128                   # lane-dense slab width (single unmasked store)
XIN_W = DIMS[0] + N_CONTEXT  # packed input width: x cols [0,16), ctx [16,18)

# TODO(synk): context_in_input=True branch (context_input_layer add) is not
# implemented; the module default is False and that is what is mirrored here.
# TODO(synk): optional no-acts fast path (pack the 8-col output 16 logical
# rows per 128-lane row) not implemented; bf16 slab already halves the write.


def _round_up(n, m):
    return ((n + m - 1) // m) * m


# ------------------------------- kernel -------------------------------------
def glnnet_kernel(xin_ref, wf0_ref, wf1_ref, slab_ref):
    """One batch tile of the fused GLNNet forward, fully VMEM-resident.

    xin_ref : (TB, 18)   compute dtype; x in cols [0,16), context in [16,18)
    wf0_ref : (16, 128)  fused gated weight for context index 0
    wf1_ref : (16, 128)  fused gated weight for context index 1
    slab_ref: (TB, 128)  packed output: cols [0,32)=hidden act, [32,40)=output
    """
    d0 = wf0_ref.shape[0]
    xin = xin_ref[...]
    x = xin[:, :d0]                                          # (TB, 16)
    # argmax over 2 contexts == one 2-way VPU select (index 0 wins ties,
    # matching torch.argmax first-occurrence behaviour).
    sel0 = xin[:, d0:d0 + 1] >= xin[:, d0 + 1:d0 + 2]        # (TB, 1) bool

    s0 = jnp.dot(x, wf0_ref[...], preferred_element_type=jnp.float32)
    s1 = jnp.dot(x, wf1_ref[...], preferred_element_type=jnp.float32)
    slab_ref[...] = jnp.where(sel0, s0, s1).astype(slab_ref.dtype)


# --------------------------- one-time param prep -----------------------------
def prepare_glnnet_params(W0, W1, ctx_to_pathway_map, compute_dtype=jnp.float32):
    """Hoisted, call-once fusion of weights + gating mask.

    W0: (D1, D0), W1: (D2, D1) in torch nn.Linear (out, in) layout.
    Returns (wf0, wf1, mapn):
      wf_k cols [0,D1)     = W0.T * mask_k        -> x @ wf_k gives hidden act
      wf_k cols [D1,D1+D2) = (W0.T*mask_k) @ W1.T -> x @ wf_k gives the output
      mapn (2, D1) f32     = context->neuron mask table (lazy mask rebuild only).
    compute_dtype=jnp.bfloat16 feeds MXU-native operands on v5e/v6e/v7x; the
    accumulation stays f32 inside the kernel.
    """
    D1, D0 = W0.shape
    D2 = W1.shape[0]
    assert D1 + D2 <= DPAD
    mapn = jnp.repeat(ctx_to_pathway_map.astype(jnp.float32),
                      PATHWAY_SIZES[GATEABLE_LAYER], axis=1)         # (2, D1)
    w0t = W0.T.astype(jnp.float32)                                   # (D0, D1)
    w1t = W1.T.astype(jnp.float32)                                   # (D1, D2)
    wfs = []
    for k in range(N_CONTEXT):
        gated = w0t * mapn[k][None, :]                               # (D0, D1)
        wf = jnp.zeros((D0, DPAD), jnp.float32)
        wf = wf.at[:, :D1].set(gated)
        wf = wf.at[:, D1:D1 + D2].set(gated @ w1t)
        wfs.append(wf.astype(compute_dtype))
    return wfs[0], wfs[1], mapn


# ------------------------------- wrapper -------------------------------------
def _pick_tile(batch, tile_b):
    # Big tiles amortize the ~0.35us per-grid-step overhead, but keep >= 4
    # steps when the batch allows so each v7x TensorCore gets >= 2 steps of
    # prefetch / writeback overlap.
    tb = _round_up(max((batch + 3) // 4, 8), 8)
    return max(8, min(tb, tile_b, _round_up(batch, 8)))


def glnnet_forward(x, context, params, *, tile_b=1024,
                   out_dtype=jnp.float32, return_masks=False):
    """Returns (out, acts, masks) matching GLNNet.forward semantics.

    params = prepare_glnnet_params(...). masks is None unless return_masks=True
    (they are reconstructed lazily outside the kernel hot path).
    """
    wf0, wf1, mapn = params
    B, D0 = x.shape
    D1, D2 = DIMS[1], DIMS[2]
    assert D0 == DIMS[0]
    assert context.shape == (B, N_CONTEXT) and N_CONTEXT == 2
    compute_dtype = wf0.dtype

    # Densified input stream: x + context packed into one contiguous array so
    # the kernel reads a single dense DMA instead of two skinny blocks.
    # (In production emit this layout at the producer rather than re-packing.)
    # NOTE: with bf16 compute the context is compared in bf16 -- exact for the
    # one-hot / 0-1 contexts this module uses.
    xin = jnp.concatenate(
        [x, context.astype(x.dtype)], axis=-1).astype(compute_dtype)

    tb = _pick_tile(B, tile_b)
    b_pad = _round_up(B, tb)
    if b_pad != B:
        xin = jnp.pad(xin, ((0, b_pad - B), (0, 0)))

    in_isz = jnp.dtype(compute_dtype).itemsize
    out_isz = jnp.dtype(out_dtype).itemsize
    cost = pl.CostEstimate(
        flops=2 * 2 * b_pad * D0 * DPAD,
        transcendentals=0,
        bytes_accessed=b_pad * (XIN_W * in_isz + DPAD * out_isz)
                       + 2 * D0 * DPAD * in_isz)

    slab = pl.pallas_call(
        glnnet_kernel,
        out_shape=jax.ShapeDtypeStruct((b_pad, DPAD), out_dtype),
        grid=(b_pad // tb,),
        in_specs=[
            pl.BlockSpec((tb, XIN_W), lambda i: (i, 0)),      # packed x+ctx tile
            pl.BlockSpec((D0, DPAD), lambda i: (0, 0)),       # resident fused W (ctx 0)
            pl.BlockSpec((D0, DPAD), lambda i: (0, 0)),       # resident fused W (ctx 1)
        ],
        out_specs=pl.BlockSpec((tb, DPAD), lambda i: (i, 0)), # lane-dense slab
        compiler_params=pltpu.CompilerParams(
            dimension_semantics=("parallel",)),               # 2 TCs on v7x
        cost_estimate=cost,
    )(xin, wf0, wf1)

    h = slab[:B, :D1]
    out = slab[:B, D1:D1 + D2]
    acts = [x, h, out]            # masks[0] is all-ones -> masks[0] * x == x
    masks = None
    if return_masks:              # lazily reconstructed, never in the hot path
        sel = context[:, 0:1] >= context[:, 1:2]
        m1 = jnp.where(sel, mapn[0:1, :], mapn[1:2, :])
        masks = [jnp.ones((B, D0), jnp.float32), m1,
                 jnp.ones((B, D2), jnp.float32)]
    return out, acts, masks


# --------------------------- reference (plain JAX) ---------------------------
def glnnet_forward_ref(x, context, W0, W1, ctx_to_pathway_map):
    idx = jnp.argmax(context, axis=1)
    pmask = ctx_to_pathway_map[idx]                                    # (B, P)
    m1 = jnp.repeat(pmask, PATHWAY_SIZES[GATEABLE_LAYER], axis=1)      # (B, D1)
    h = m1 * (x @ W0.T)
    out = h @ W1.T
    return out, h, m1


# ---------------------------------- main -------------------------------------
if __name__ == "__main__":
    key = jax.random.PRNGKey(0)
    k_x, k_c, k_w0, k_w1 = jax.random.split(key, 4)

    B = 1000   # exercises batch padding: 1000 -> 1024 rows = 4 tiles of 256
    x = jax.random.normal(k_x, (B, DIMS[0]), jnp.float32)

    # one-hot context
    ctx_idx = jax.random.randint(k_c, (B,), 0, N_CONTEXT)
    context = jax.nn.one_hot(ctx_idx, N_CONTEXT, dtype=jnp.float32)

    # nn.Linear-style init (uniform +/- 1/sqrt(fan_in), bias=False)
    b0 = 1.0 / (DIMS[0] ** 0.5)
    b1 = 1.0 / (DIMS[1] ** 0.5)
    W0 = jax.random.uniform(k_w0, (DIMS[1], DIMS[0]), jnp.float32, -b0, b0)
    W1 = jax.random.uniform(k_w1, (DIMS[2], DIMS[1]), jnp.float32, -b1, b1)

    # default context_to_pathway_mapping = eye(pathways[gateable])
    ctx_to_pathway_map = jnp.eye(PATHWAYS[GATEABLE_LAYER], dtype=jnp.float32)

    ref_out, ref_h, ref_m1 = glnnet_forward_ref(x, context, W0, W1,
                                                ctx_to_pathway_map)

    # ---- module-exact path: f32 operands, f32 slab ----
    params_f32 = prepare_glnnet_params(W0, W1, ctx_to_pathway_map, jnp.float32)
    fwd_f32 = jax.jit(functools.partial(glnnet_forward, return_masks=True))
    out, acts, masks = fwd_f32(x, context, params_f32)
    out = jax.block_until_ready(out)
    assert jnp.allclose(out, ref_out, atol=1e-5, rtol=1e-5)
    assert jnp.allclose(acts[1], ref_h, atol=1e-5, rtol=1e-5)
    assert jnp.allclose(masks[1], ref_m1, atol=1e-6)

    # ---- throughput path: bf16 operands + bf16 slab (halves the HBM write) ----
    params_bf16 = prepare_glnnet_params(W0, W1, ctx_to_pathway_map, jnp.bfloat16)
    fwd_bf16 = jax.jit(functools.partial(glnnet_forward, out_dtype=jnp.bfloat16))
    out_bf16, _, _ = fwd_bf16(x, context, params_bf16)
    out_bf16 = jax.block_until_ready(out_bf16)
    assert jnp.allclose(out_bf16.astype(jnp.float32), ref_out,
                        atol=5e-2, rtol=5e-2)

    print("KERNEL_OK")
</pallas_src>

<mosaic_0001>
module attributes {stable_mosaic.version = 11 : i64} {
  func.func @glnnet_kernel(%arg0: i32, %arg1: memref<256x18xf32, #tpu.memory_space<vmem>>, %arg2: memref<16x128xf32, #tpu.memory_space<vmem>>, %arg3: memref<16x128xf32, #tpu.memory_space<vmem>>, %arg4: memref<256x128xf32, #tpu.memory_space<vmem>>) attributes {dimension_semantics = [#tpu.dimension_semantics<parallel>], iteration_bounds = array<i64: 4>, scalar_prefetch = 0 : i64, scratch_operands = 0 : i64, tpu.core_type = #tpu.core_type<tc>, window_params = [{transform_indices = @transform_0, window_bounds = array<i64: 256, 18>}, {pipeline_mode = #tpu.pipeline_mode<synchronous>, transform_indices = @transform_1, window_bounds = array<i64: 16, 128>}, {pipeline_mode = #tpu.pipeline_mode<synchronous>, transform_indices = @transform_2, window_bounds = array<i64: 16, 128>}, {transform_indices = @transform_3, window_bounds = array<i64: 256, 128>}]} {
    %c0 = arith.constant 0 : index
    %c0_0 = arith.constant 0 : index
    %0 = vector.load %arg1[%c0, %c0_0] : memref<256x18xf32, #tpu.memory_space<vmem>>, vector<256x18xf32>
    %1 = vector.extract_strided_slice %0 {offsets = [0, 0], sizes = [256, 16], strides = [1, 1]} : vector<256x18xf32> to vector<256x16xf32>
    %2 = vector.extract_strided_slice %0 {offsets = [0, 16], sizes = [256, 1], strides = [1, 1]} : vector<256x18xf32> to vector<256x1xf32>
    %3 = vector.extract_strided_slice %0 {offsets = [0, 17], sizes = [256, 1], strides = [1, 1]} : vector<256x18xf32> to vector<256x1xf32>
    %4 = arith.cmpf oge, %2, %3 : vector<256x1xf32>
    %c0_1 = arith.constant 0 : index
    %c0_2 = arith.constant 0 : index
    %5 = vector.load %arg2[%c0_1, %c0_2] : memref<16x128xf32, #tpu.memory_space<vmem>>, vector<16x128xf32>
    %cst = arith.constant dense<0.000000e+00> : vector<256x128xf32>
    %6 = tpu.matmul %1, %5, %cst {dimension_numbers = #tpu.dot_dimension_numbers<[1], [0], [0], [1], [0, 0, 1, 1], [], []>} : vector<256x16xf32>, vector<16x128xf32>, vector<256x128xf32> -> vector<256x128xf32>
    %c0_3 = arith.constant 0 : index
    %c0_4 = arith.constant 0 : index
    %7 = vector.load %arg3[%c0_3, %c0_4] : memref<16x128xf32, #tpu.memory_space<vmem>>, vector<16x128xf32>
    %cst_5 = arith.constant dense<0.000000e+00> : vector<256x128xf32>
    %8 = tpu.matmul %1, %7, %cst_5 {dimension_numbers = #tpu.dot_dimension_numbers<[1], [0], [0], [1], [0, 0, 1, 1], [], []>} : vector<256x16xf32>, vector<16x128xf32>, vector<256x128xf32> -> vector<256x128xf32>
    %9 = vector.shape_cast %4 : vector<256x1xi1> to vector<256x1xi1>
    %10 = vector.broadcast %9 : vector<256x1xi1> to vector<256x128xi1>
    %11 = arith.select %10, %6, %8 : vector<256x128xi1>, vector<256x128xf32>
    %c0_6 = arith.constant 0 : index
    %c0_7 = arith.constant 0 : index
    %12 = vector.load %arg4[%c0_6, %c0_7] : memref<256x128xf32, #tpu.memory_space<vmem>>, vector<256x128xf32>
    tpu.vector_store %arg4[%c0_6, %c0_7], %11 {strides = array<i32>} : memref<256x128xf32, #tpu.memory_space<vmem>>, vector<256x128xf32>,
    return
  }
  func.func @transform_0(%arg0: i32) -> (i32, i32) {
    %c0_i32 = arith.constant 0 : i32
    %c0_i32_0 = arith.constant 0 : i32
    return %arg0, %c0_i32 : i32, i32
  }
  func.func @transform_1(%arg0: i32) -> (i32, i32) {
    %c0_i32 = arith.constant 0 : i32
    %c0_i32_0 = arith.constant 0 : i32
    %c0_i32_1 = arith.constant 0 : i32
    return %c0_i32, %c0_i32_0 : i32, i32
  }
  func.func @transform_2(%arg0: i32) -> (i32, i32) {
    %c0_i32 = arith.constant 0 : i32
    %c0_i32_0 = arith.constant 0 : i32
    %c0_i32_1 = arith.constant 0 : i32
    return %c0_i32, %c0_i32_0 : i32, i32
  }
  func.func @transform_3(%arg0: i32) -> (i32, i32) {
    %c0_i32 = arith.constant 0 : i32
    %c0_i32_0 = arith.constant 0 : i32
    return %arg0, %c0_i32 : i32, i32
  }
}

</mosaic_0001>

<bundles_post_ra>
// kernel: glnnet_forward.1
= control target key start
LH: loop header
LB: loop body
LE: loop exit
PB: predicated region body
PF: predicated region fallthrough
CT: control target
= control target key end

     0   :  { %s1464_s12 = smov 0   ;;  %s2038_s0 = inlined_call_operand.vmem [shape: f32[1024,18], index: 0, kind: input, shape index: {}]   ;;  %s2039_s1 = inlined_call_operand.vmem [shape: f32[16,128], index: 1, kind: input, shape index: {}]   ;;  %s2040_s2 = inlined_call_operand.vmem [shape: f32[16,128], index: 2, kind: input, shape index: {}]   ;;  %s2041_s3 = inlined_call_operand.vmem [shape: f32[1024,128], index: 3, kind: output, shape index: {}]  }
   0x1 LB: > { %s1165_s13 = sadd.s32 4294967295, %s1439_s12   ;;  %p1169_p0 = scmp.ge.s32.totalorder %s1439_s12, 1  ;;  %s1439_s12 = sphi %s1464_s12, %s13_s12  }
   0x2   : > { %p138_p1 = scmp.lt.s32.totalorder %s1439_s12, 5 }
   0x4   : > { %p139_p2 = pnand %p1169_p0, %p138_p1 }
   0x5   : > { %s1170_s14 = sshll.u32 (!%p139_p2), %s1165_s13, 5  ;;  %v366_v0 = vld [vmem:[%s2039_s1] sm:$0xff] (!%p139_p2)  ;;  %v367_v1 = vld [vmem:[%s2039_s1 + $0x8] sm:$0xff] (!%p139_p2)  ;;  %v1441_v6 = vmov (!%p139_p2), 16   ;;  %vm368_vm0 = vcmask (!%p139_p2), 130048   ;;  %s1442_s27 = smov (!%p139_p2), 127  }
   0x6   : > { %142 = sbr.rel (%p139_p2) target bundleno = 329 (0x149), region = 32  ;;  %v658_v2 = vld [vmem:[%s2040_s2] sm:$0xff] (!%p139_p2)  ;;  %p163_p3 = scmp.lt.s32.totalorder (!%p139_p2), %s1170_s14, 127  ;;  %v1412_v3 = vpack.c.bf16 (!%p139_p2), %v367_v1, %v366_v0  ;;  %v659_v4 = vld [vmem:[%s2040_s2 + $0x8] sm:$0xff] (!%p139_p2)  ;;  %1431 = vset.pattern.permute.xlu0 (!%p139_p2), %v1441_v6  ;;  %1432 = vset.pattern.permute.xlu1 (!%p139_p2), %v1441_v6  ;;  %v1443_v41 = vmov (!%p139_p2), 0  }
   0x7   : > { %v1416_v5 = vpack.c.bf16 (!%p139_p2), %v659_v4, %v658_v2 }
   0x8   : > { %1413 = vmatprep.subr.bf16.mxu0 (!%p139_p2), %v1412_v3 }
   0x9   : > { %1417 = vmatprep.subr.bf16.mxu1 (!%p139_p2), %v1416_v5  ;;  %1415 = vmatpush3.bf16.msra.mxu0 (!%p139_p2), %v1412_v3 }
   0xa   : > { %1419 = vmatpush3.bf16.msra.mxu1 (!%p139_p2), %v1416_v5 }
   0xd   : > { %s2043_s14 = smov (!%p163_p3, %s1170_s14), 127 }
   0xe   : > { %s1171_s23 = sshll.u32 %s2043_s14, 3 }
   0xf   : > { %s1492_s26 = scalar_lea.vmem %s2038_s0, %s1171_s23  ;;  %s1887_s30 = scalar_lea.vmem %s2041_s3, %s1171_s23 }
  0x10   : > { %v1495_v7 = vld [vmem:[%s1492_s26 + $0x10] sm:$0xff]  ;;  %v1498_v8 = vld [vmem:[%s1492_s26] sm:$0xff]  ;;  %v1505_v9 = vld [vmem:[%s1492_s26 + $0x18] sm:$0xff] }
  0x11   : > { %242 = vrot.lane.b32.xlu1 %v1495_v7, %s1442_s27  ;;  %238 = vrot.lane.b32.xlu0 %v1498_v8, %s1442_s27  ;;  %v1508_v10 = vld [vmem:[%s1492_s26 + $0x8] sm:$0xff]  ;;  %v1530_v12 = vld [vmem:[%s1492_s26 + $0x20] sm:$0xff] }
  0x12   : > { %1312 = vmatprep.mubr.msk.f32.mxu0 %vm368_vm0, %v1498_v8  ;;  %1364 = vmatprep.mubr.msk.f32.mxu1 %vm368_vm0, %v1498_v8  ;;  %v1527_v11 = vld [vmem:[%s1492_s26 + $0x28] sm:$0xff]  ;;  %v1545_v13 = vld [vmem:[%s1492_s26 + $0x38] sm:$0xff]  ;;  %v1548_v14 = vld [vmem:[%s1492_s26 + $0x30] sm:$0xff] }
  0x13   : > { %1313 = vmatmul.mubr.msk.f32.vlgmr.msra.gmra.mrb[0].mxu0 %vm368_vm0, %v1508_v10  ;;  %1365 = vmatmul.mubr.msk.f32.vlgmr.msra.gmra.mrb[0].mxu1 %vm368_vm0, %v1508_v10  ;;  %v1563_v15 = vld [vmem:[%s1492_s26 + $0x48] sm:$0xff]  ;;  %v1566_v16 = vld [vmem:[%s1492_s26 + $0x40] sm:$0xff]  ;;  %v1581_v17 = vld [vmem:[%s1492_s26 + $0x58] sm:$0xff] }
  0x14   : > { %1315 = vmatprep.mubr.msk.f32.mxu0 %vm368_vm0, %v1495_v7  ;;  %1367 = vmatprep.mubr.msk.f32.mxu1 %vm368_vm0, %v1495_v7  ;;  %v1584_v18 = vld [vmem:[%s1492_s26 + $0x50] sm:$0xff]  ;;  %v1599_v19 = vld [vmem:[%s1492_s26 + $0x68] sm:$0xff]  ;;  %v1602_v20 = vld [vmem:[%s1492_s26 + $0x60] sm:$0xff] }
  0x15   : > { %244 = vrot.lane.b32.xlu1 %v1505_v9, %s1442_s27  ;;  %240 = vrot.lane.b32.xlu0 %v1508_v10, %s1442_s27  ;;  %v1617_v21 = vld [vmem:[%s1492_s26 + $0x78] sm:$0xff]  ;;  %v1620_v22 = vld [vmem:[%s1492_s26 + $0x70] sm:$0xff] }
  0x16   : > { %v1635_v23 = vld [vmem:[%s1492_s26 + $0x88] sm:$0xff]  ;;  %v1638_v24 = vld [vmem:[%s1492_s26 + $0x80] sm:$0xff]  ;;  %v1653_v25 = vld [vmem:[%s1492_s26 + $0x98] sm:$0xff] }
  0x17   : > { %1316 = vmatmul.mubr.msk.f32.gmra.mrb[2].mxu0 %vm368_vm0, %v1505_v9  ;;  %1368 = vmatmul.mubr.msk.f32.gmra.mrb[2].mxu1 %vm368_vm0, %v1505_v9  ;;  %v1656_v26 = vld [vmem:[%s1492_s26 + $0x90] sm:$0xff]  ;;  %v1671_v27 = vld [vmem:[%s1492_s26 + $0xa8] sm:$0xff]  ;;  %v1674_v28 = vld [vmem:[%s1492_s26 + $0xa0] sm:$0xff] }
  0x18   : > { %1318 = vmatprep.mubr.msk.f32.mxu0 %vm368_vm0, %v1530_v12  ;;  %1370 = vmatprep.mubr.msk.f32.mxu1 %vm368_vm0, %v1530_v12  ;;  %v1689_v29 = vld [vmem:[%s1492_s26 + $0xb8] sm:$0xff]  ;;  %v1692_v30 = vld [vmem:[%s1492_s26 + $0xb0] sm:$0xff]  ;;  %v1707_v31 = vld [vmem:[%s1492_s26 + $0xc8] sm:$0xff] }
  0x19   : > { %248 = vrot.lane.b32.xlu1 %v1527_v11, %s1442_s27  ;;  %246 = vrot.lane.b32.xlu0 %v1530_v12, %s1442_s27  ;;  %v1710_v32 = vld [vmem:[%s1492_s26 + $0xc0] sm:$0xff]  ;;  %v1725_v33 = vld [vmem:[%s1492_s26 + $0xd8] sm:$0xff] }
  0x1a   : > { %v1728_v34 = vld [vmem:[%s1492_s26 + $0xd0] sm:$0xff]  ;;  %v1743_v35 = vld [vmem:[%s1492_s26 + $0xe8] sm:$0xff]  ;;  %v1746_v36 = vld [vmem:[%s1492_s26 + $0xe0] sm:$0xff] }
  0x1b   : > { %1319 = vmatmul.mubr.msk.f32.gmra.mrb[4].mxu0 %vm368_vm0, %v1527_v11  ;;  %1371 = vmatmul.mubr.msk.f32.gmra.mrb[4].mxu1 %vm368_vm0, %v1527_v11  ;;  %v1761_v37 = vld [vmem:[%s1492_s26 + $0xf8] sm:$0xff]  ;;  %v1764_v38 = vld [vmem:[%s1492_s26 + $0xf0] sm:$0xff] }
  0x1c   : > { %1321 = vmatprep.mubr.msk.f32.mxu0 %vm368_vm0, %v1548_v14  ;;  %1373 = vmatprep.mubr.msk.f32.mxu1 %vm368_vm0, %v1548_v14 }
  0x1d   : > { %252 = vrot.lane.b32.xlu1 %v1545_v13, %s1442_s27  ;;  %250 = vrot.lane.b32.xlu0 %v1548_v14, %s1442_s27 }
  0x1f   : > { %1322 = vmatmul.mubr.msk.f32.gmra.mrb[6].mxu0 %vm368_vm0, %v1545_v13  ;;  %1374 = vmatmul.mubr.msk.f32.gmra.mrb[6].mxu1 %vm368_vm0, %v1545_v13 }
  0x20   : > { %1324 = vmatprep.mubr.msk.f32.mxu0 %vm368_vm0, %v1566_v16  ;;  %1376 = vmatprep.mubr.msk.f32.mxu1 %vm368_vm0, %v1566_v16 }
  0x21   : > { %256 = vrot.lane.b32.xlu1 %v1563_v15, %s1442_s27  ;;  %254 = vrot.lane.b32.xlu0 %v1566_v16, %s1442_s27 }
  0x23   : > { %1325 = vmatmul.mubr.msk.f32.gmra.mrb[8].mxu0 %vm368_vm0, %v1563_v15  ;;  %1377 = vmatmul.mubr.msk.f32.gmra.mrb[8].mxu1 %vm368_vm0, %v1563_v15 }
  0x24   : > { %1327 = vmatprep.mubr.msk.f32.mxu0 %vm368_vm0, %v1584_v18  ;;  %1379 = vmatprep.mubr.msk.f32.mxu1 %vm368_vm0, %v1584_v18 }
  0x25   : > { %260 = vrot.lane.b32.xlu1 %v1581_v17, %s1442_s27  ;;  %258 = vrot.lane.b32.xlu0 %v1584_v18, %s1442_s27 }
  0x27   : > { %1328 = vmatmul.mubr.msk.f32.gmra.mrb[10].mxu0 %vm368_vm0, %v1581_v17  ;;  %1380 = vmatmul.mubr.msk.f32.gmra.mrb[10].mxu1 %vm368_vm0, %v1581_v17 }
  0x28   : > { %1330 = vmatprep.mubr.msk.f32.mxu0 %vm368_vm0, %v1602_v20  ;;  %1382 = vmatprep.mubr.msk.f32.mxu1 %vm368_vm0, %v1602_v20 }
  0x29   : > { %264 = vrot.lane.b32.xlu1 %v1599_v19, %s1442_s27  ;;  %262 = vrot.lane.b32.xlu0 %v1602_v20, %s1442_s27 }
  0x2b   : > { %1331 = vmatmul.mubr.msk.f32.gmra.mrb[12].mxu0 %vm368_vm0, %v1599_v19  ;;  %1383 = vmatmul.mubr.msk.f32.gmra.mrb[12].mxu1 %vm368_vm0, %v1599_v19 }
  0x2c   : > { %1333 = vmatprep.mubr.msk.f32.mxu0 %vm368_vm0, %v1620_v22  ;;  %1385 = vmatprep.mubr.msk.f32.mxu1 %vm368_vm0, %v1620_v22 }
  0x2d   : > { %268 = vrot.lane.b32.xlu1 %v1617_v21, %s1442_s27  ;;  %266 = vrot.lane.b32.xlu0 %v1620_v22, %s1442_s27 }
  0x2f   : > { %1334 = vmatmul.mubr.msk.f32.gmra.mrb[14].mxu0 %vm368_vm0, %v1617_v21  ;;  %1386 = vmatmul.mubr.msk.f32.gmra.mrb[14].mxu1 %vm368_vm0, %v1617_v21 }
  0x30   : > { %1336 = vmatprep.mubr.msk.f32.mxu0 %vm368_vm0, %v1638_v24  ;;  %1388 = vmatprep.mubr.msk.f32.mxu1 %vm368_vm0, %v1638_v24 }
  0x31   : > { %272 = vrot.lane.b32.xlu1 %v1635_v23, %s1442_s27  ;;  %270 = vrot.lane.b32.xlu0 %v1638_v24, %s1442_s27 }
  0x33   : > { %1337 = vmatmul.mubr.msk.f32.gmra.mrb[16].mxu0 %vm368_vm0, %v1635_v23  ;;  %1389 = vmatmul.mubr.msk.f32.gmra.mrb[16].mxu1 %vm368_vm0, %v1635_v23 }
  0x34   : > { %1339 = vmatprep.mubr.msk.f32.mxu0 %vm368_vm0, %v1656_v26  ;;  %1391 = vmatprep.mubr.msk.f32.mxu1 %vm368_vm0, %v1656_v26 }
  0x35   : > { %276 = vrot.lane.b32.xlu1 %v1653_v25, %s1442_s27  ;;  %274 = vrot.lane.b32.xlu0 %v1656_v26, %s1442_s27 }
  0x37   : > { %1340 = vmatmul.mubr.msk.f32.gmra.mrb[18].mxu0 %vm368_vm0, %v1653_v25  ;;  %1392 = vmatmul.mubr.msk.f32.gmra.mrb[18].mxu1 %vm368_vm0, %v1653_v25 }
  0x38   : > { %1342 = vmatprep.mubr.msk.f32.mxu0 %vm368_vm0, %v1674_v28  ;;  %1394 = vmatprep.mubr.msk.f32.mxu1 %vm368_vm0, %v1674_v28 }
  0x39   : > { %280 = vrot.lane.b32.xlu1 %v1671_v27, %s1442_s27  ;;  %278 = vrot.lane.b32.xlu0 %v1674_v28, %s1442_s27 }
  0x3b   : > { %1343 = vmatmul.mubr.msk.f32.gmra.mrb[20].mxu0 %vm368_vm0, %v1671_v27  ;;  %1395 = vmatmul.mubr.msk.f32.gmra.mrb[20].mxu1 %vm368_vm0, %v1671_v27 }
  0x3c   : > { %1345 = vmatprep.mubr.msk.f32.mxu0 %vm368_vm0, %v1692_v30  ;;  %1397 = vmatprep.mubr.msk.f32.mxu1 %vm368_vm0, %v1692_v30 }
  0x3d   : > { %284 = vrot.lane.b32.xlu1 %v1689_v29, %s1442_s27  ;;  %282 = vrot.lane.b32.xlu0 %v1692_v30, %s1442_s27 }
  0x3f   : > { %1346 = vmatmul.mubr.msk.f32.gmra.mrb[22].mxu0 %vm368_vm0, %v1689_v29  ;;  %1398 = vmatmul.mubr.msk.f32.gmra.mrb[22].mxu1 %vm368_vm0, %v1689_v29 }
  0x40   : > { %1348 = vmatprep.mubr.msk.f32.mxu0 %vm368_vm0, %v1710_v32  ;;  %1400 = vmatprep.mubr.msk.f32.mxu1 %vm368_vm0, %v1710_v32 }
  0x41   : > { %288 = vrot.lane.b32.xlu1 %v1707_v31, %s1442_s27  ;;  %286 = vrot.lane.b32.xlu0 %v1710_v32, %s1442_s27 }
  0x43   : > { %1349 = vmatmul.mubr.msk.f32.gmra.mrb[24].mxu0 %vm368_vm0, %v1707_v31  ;;  %1401 = vmatmul.mubr.msk.f32.gmra.mrb[24].mxu1 %vm368_vm0, %v1707_v31 }
  0x44   : > { %1351 = vmatprep.mubr.msk.f32.mxu0 %vm368_vm0, %v1728_v34  ;;  %1403 = vmatprep.mubr.msk.f32.mxu1 %vm368_vm0, %v1728_v34 }
  0x45   : > { %292 = vrot.lane.b32.xlu1 %v1725_v33, %s1442_s27  ;;  %290 = vrot.lane.b32.xlu0 %v1728_v34, %s1442_s27 }
  0x47   : > { %1352 = vmatmul.mubr.msk.f32.gmra.mrb[26].mxu0 %vm368_vm0, %v1725_v33  ;;  %1404 = vmatmul.mubr.msk.f32.gmra.mrb[26].mxu1 %vm368_vm0, %v1725_v33 }
  0x48   : > { %1354 = vmatprep.mubr.msk.f32.mxu0 %vm368_vm0, %v1746_v36  ;;  %1406 = vmatprep.mubr.msk.f32.mxu1 %vm368_vm0, %v1746_v36 }
  0x49   : > { %296 = vrot.lane.b32.xlu1 %v1743_v35, %s1442_s27  ;;  %294 = vrot.lane.b32.xlu0 %v1746_v36, %s1442_s27 }
  0x4b   : > { %1355 = vmatmul.mubr.msk.f32.gmra.mrb[28].mxu0 %vm368_vm0, %v1743_v35  ;;  %1407 = vmatmul.mubr.msk.f32.gmra.mrb[28].mxu1 %vm368_vm0, %v1743_v35 }
  0x4c   : > { %1357 = vmatprep.mubr.msk.f32.mxu0 %vm368_vm0, %v1764_v38  ;;  %1409 = vmatprep.mubr.msk.f32.mxu1 %vm368_vm0, %v1764_v38 }
  0x4d   : > { %300 = vrot.lane.b32.xlu1 %v1761_v37, %s1442_s27  ;;  %298 = vrot.lane.b32.xlu0 %v1764_v38, %s1442_s27 }
  0x4f   : > { %1358 = vmatmul.mubr.msk.f32.gmra.mrb[30].mxu0 %vm368_vm0, %v1761_v37  ;;  %1410 = vmatmul.mubr.msk.f32.gmra.mrb[30].mxu1 %vm368_vm0, %v1761_v37 }
  0x83   : > { %v243_v39 = vpop.permute.xlu1 %242  ;;  %v239_v40 = vpop.permute.xlu0 %238 }
  0x84   : > { %vm334_vm1 = vcmp.ge.f32.partialorder %v1498_v8, %v239_v40  ;;  %vm336_vm4 = vcmp.ge.f32.partialorder %v1495_v7, %v243_v39 }
  0x85   : > { %v885_v42 = vsel %vm334_vm1, 1, %v1443_v41  ;;  %v887_v49 = vsel %vm336_vm4, 1, %v1443_v41 }
  0x86   : > { %918 = vperm.xlu0 %1431, %v885_v42  }
  0x87   : > { %v245_v43 = vpop.permute.xlu1 %244  ;;  %v241_v44 = vpop.permute.xlu0 %240 }
  0x88   : > { %vm337_vm2 = vcmp.ge.f32.partialorder %v1505_v9, %v245_v43  ;;  %vm335_vm3 = vcmp.ge.f32.partialorder %v1508_v10, %v241_v44 }
  0x89   : > { %v888_v45 = vsel %vm337_vm2, 1, %v1443_v41  ;;  %v886_v46 = vsel %vm335_vm3, 1, %v1443_v41 }
  0x8a   : > { %927 = vperm.xlu0 %1431, %v888_v45   ;;  %921 = vperm.xlu1 %1432, %v886_v46  }
  0x8b   : > { %v249_v47 = vpop.permute.xlu1 %248  ;;  %v247_v48 = vpop.permute.xlu0 %246 }
  0x8c   : > { %vm339_vm5 = vcmp.ge.f32.partialorder %v1527_v11, %v249_v47  ;;  %vm338_vm6 = vcmp.ge.f32.partialorder %v1530_v12, %v247_v48 }
  0x8d   : > { %v890_v50 = vsel %vm339_vm5, 1, %v1443_v41  ;;  %v889_v52 = vsel %vm338_vm6, 1, %v1443_v41 }
  0x8e   : > { %933 = vperm.xlu0 %1431, %v890_v50   ;;  %924 = vperm.xlu1 %1432, %v887_v49  }
  0x8f   : > { %v253_v51 = vpop.permute.xlu1 %252  ;;  %v251_v53 = vpop.permute.xlu0 %250 }
  0x90   : > { %vm341_vm7 = vcmp.ge.f32.partialorder %v1545_v13, %v253_v51  ;;  %vm340_vm8 = vcmp.ge.f32.partialorder %v1548_v14, %v251_v53 }
  0x91   : > { %v892_v54 = vsel %vm341_vm7, 1, %v1443_v41  ;;  %v891_v56 = vsel %vm340_vm8, 1, %v1443_v41 }
  0x92   : > { %939 = vperm.xlu0 %1431, %v892_v54   ;;  %930 = vperm.xlu1 %1432, %v889_v52  }
  0x93   : > { %v257_v55 = vpop.permute.xlu1 %256  ;;  %v255_v57 = vpop.permute.xlu0 %254 }
  0x94   : > { %vm343_vm9 = vcmp.ge.f32.partialorder %v1563_v15, %v257_v55  ;;  %vm342_vm10 = vcmp.ge.f32.partialorder %v1566_v16, %v255_v57 }
  0x95   : > { %v894_v58 = vsel %vm343_vm9, 1, %v1443_v41  ;;  %v893_v60 = vsel %vm342_vm10, 1, %v1443_v41 }
  0x96   : > { %945 = vperm.xlu0 %1431, %v894_v58   ;;  %936 = vperm.xlu1 %1432, %v891_v56  }
  0x97   : > { %v261_v59 = vpop.permute.xlu1 %260  ;;  %v259_v61 = vpop.permute.xlu0 %258 }
  0x98   : > { %vm345_vm11 = vcmp.ge.f32.partialorder %v1581_v17, %v261_v59  ;;  %vm344_vm12 = vcmp.ge.f32.partialorder %v1584_v18, %v259_v61 }
  0x99   : > { %v896_v62 = vsel %vm345_vm11, 1, %v1443_v41  ;;  %v895_v0 = vsel %vm344_vm12, 1, %v1443_v41 }
  0x9a   : > { %951 = vperm.xlu0 %1431, %v896_v62   ;;  %942 = vperm.xlu1 %1432, %v893_v60  }
  0x9b   : > { %v265_v63 = vpop.permute.xlu1 %264  ;;  %v263_v1 = vpop.permute.xlu0 %262 }
  0x9c   : > { %vm347_vm13 = vcmp.ge.f32.partialorder %v1599_v19, %v265_v63  ;;  %vm346_vm14 = vcmp.ge.f32.partialorder %v1602_v20, %v263_v1 }
  0x9d   : > { %v898_v2 = vsel %vm347_vm13, 1, %v1443_v41  ;;  %v897_v4 = vsel %vm346_vm14, 1, %v1443_v41 }
  0x9e   : > { %957 = vperm.xlu0 %1431, %v898_v2   ;;  %948 = vperm.xlu1 %1432, %v895_v0  }
  0x9f   : > { %v269_v3 = vpop.permute.xlu1 %268  ;;  %v267_v5 = vpop.permute.xlu0 %266 }
  0xa0   : > { %vm349_vm15 = vcmp.ge.f32.partialorder %v1617_v21, %v269_v3  ;;  %vm348_vm0 = vcmp.ge.f32.partialorder %v1620_v22, %v267_v5 }
  0xa1   : > { %v900_v6 = vsel %vm349_vm15, 1, %v1443_v41  ;;  %v899_v8 = vsel %vm348_vm0, 1, %v1443_v41 }
  0xa2   : > { %963 = vperm.xlu0 %1431, %v900_v6   ;;  %954 = vperm.xlu1 %1432, %v897_v4  }
  0xa3   : > { %v273_v7 = vpop.permute.xlu1 %272  ;;  %v271_v9 = vpop.permute.xlu0 %270 }
  0xa4   : > { %vm351_vm1 = vcmp.ge.f32.partialorder %v1635_v23, %v273_v7  ;;  %vm350_vm2 = vcmp.ge.f32.partialorder %v1638_v24, %v271_v9 }
  0xa5   : > { %v902_v10 = vsel %vm351_vm1, 1, %v1443_v41  ;;  %v901_v12 = vsel %vm350_vm2, 1, %v1443_v41 }
  0xa6   : > { %969 = vperm.xlu0 %1431, %v902_v10   ;;  %960 = vperm.xlu1 %1432, %v899_v8  }
  0xa7   : > { %v277_v11 = vpop.permute.xlu1 %276  ;;  %v275_v13 = vpop.permute.xlu0 %274 }
  0xa8   : > { %vm353_vm3 = vcmp.ge.f32.partialorder %v1653_v25, %v277_v11  ;;  %vm352_vm4 = vcmp.ge.f32.partialorder %v1656_v26, %v275_v13 }
  0xa9   : > { %v904_v14 = vsel %vm353_vm3, 1, %v1443_v41  ;;  %v903_v16 = vsel %vm352_vm4, 1, %v1443_v41 }
  0xaa   : > { %975 = vperm.xlu0 %1431, %v904_v14   ;;  %966 = vperm.xlu1 %1432, %v901_v12  }
  0xab   : > { %v281_v15 = vpop.permute.xlu1 %280  ;;  %v279_v17 = vpop.permute.xlu0 %278 }
  0xac   : > { %vm355_vm5 = vcmp.ge.f32.partialorder %v1671_v27, %v281_v15  ;;  %vm354_vm6 = vcmp.ge.f32.partialorder %v1674_v28, %v279_v17 }
  0xad   : > { %v906_v18 = vsel %vm355_vm5, 1, %v1443_v41  ;;  %v905_v20 = vsel %vm354_vm6, 1, %v1443_v41 }
  0xae   : > { %981 = vperm.xlu0 %1431, %v906_v18   ;;  %972 = vperm.xlu1 %1432, %v903_v16  }
  0xaf   : > { %v285_v19 = vpop.permute.xlu1 %284  ;;  %v283_v21 = vpop.permute.xlu0 %282 }
  0xb0   : > { %vm357_vm7 = vcmp.ge.f32.partialorder %v1689_v29, %v285_v19  ;;  %vm356_vm8 = vcmp.ge.f32.partialorder %v1692_v30, %v283_v21 }
  0xb1   : > { %v908_v22 = vsel %vm357_vm7, 1, %v1443_v41  ;;  %v907_v24 = vsel %vm356_vm8, 1, %v1443_v41 }
  0xb2   : > { %987 = vperm.xlu0 %1431, %v908_v22   ;;  %978 = vperm.xlu1 %1432, %v905_v20  }
  0xb3   : > { %v289_v23 = vpop.permute.xlu1 %288  ;;  %v287_v25 = vpop.permute.xlu0 %286 }
  0xb4   : > { %vm359_vm9 = vcmp.ge.f32.partialorder %v1707_v31, %v289_v23  ;;  %vm358_vm10 = vcmp.ge.f32.partialorder %v1710_v32, %v287_v25 }
  0xb5   : > { %v910_v26 = vsel %vm359_vm9, 1, %v1443_v41  ;;  %v909_v28 = vsel %vm358_vm10, 1, %v1443_v41 }
  0xb6   : > { %993 = vperm.xlu0 %1431, %v910_v26   ;;  %984 = vperm.xlu1 %1432, %v907_v24  }
  0xb7   : > { %v293_v27 = vpop.permute.xlu1 %292  ;;  %v291_v29 = vpop.permute.xlu0 %290 }
  0xb8   : > { %vm361_vm11 = vcmp.ge.f32.partialorder %v1725_v33, %v293_v27  ;;  %vm360_vm12 = vcmp.ge.f32.partialorder %v1728_v34, %v291_v29 }
  0xb9   : > { %v912_v30 = vsel %vm361_vm11, 1, %v1443_v41  ;;  %v911_v31 = vsel %vm360_vm12, 1, %v1443_v41 }
  0xba   : > { %999 = vperm.xlu0 %1431, %v912_v30   ;;  %990 = vperm.xlu1 %1432, %v909_v28  }
  0xbb   : > { %v297_v39 = vpop.permute.xlu1 %296  ;;  %v295_v32 = vpop.permute.xlu0 %294 }
  0xbc   : > { %vm363_vm13 = vcmp.ge.f32.partialorder %v1743_v35, %v297_v39  ;;  %vm362_vm14 = vcmp.ge.f32.partialorder %v1746_v36, %v295_v32 }
  0xbd   : > { %v914_v40 = vsel %vm363_vm13, 1, %v1443_v41  ;;  %v913_v33 = vsel %vm362_vm14, 1, %v1443_v41 }
  0xbe   : > { %1005 = vperm.xlu0 %1431, %v914_v40   ;;  %996 = vperm.xlu1 %1432, %v911_v31  }
  0xbf   : > { %v301_v42 = vpop.permute.xlu1 %300  ;;  %v299_v34 = vpop.permute.xlu0 %298 }
  0xc0   : > { %vm365_vm15 = vcmp.ge.f32.partialorder %v1761_v37, %v301_v42  ;;  %vm364_vm0 = vcmp.ge.f32.partialorder %v1764_v38, %v299_v34 }
  0xc1   : > { %v916_v43 = vsel %vm365_vm15, 1, %v1443_v41  ;;  %v915_v35 = vsel %vm364_vm0, 1, %v1443_v41 }
  0xc2   : > { %1011 = vperm.xlu0 %1431, %v916_v43   ;;  %1002 = vperm.xlu1 %1432, %v913_v33  }
  0xc6   : > { %1008 = vperm.xlu1 %1432, %v915_v35  }
  0xe6   : > { %v1314_v36 = vpop.f32.mrb[0].mxu0  ;;  %v1366_v44 = vpop.f32.mrb[0].mxu1 }
  0xe7   : > { %v499_v45 = vpop.f32.mrb[1].mxu0  ;;  %v726_v46 = vpop.f32.mrb[1].mxu1 }
  0xea   : > { %v1317_v47 = vpop.f32.mrb[2].mxu0  ;;  %v1369_v48 = vpop.f32.mrb[2].mxu1 }
  0xeb   : > { %v509_v49 = vpop.f32.mrb[3].mxu0  ;;  %v736_v50 = vpop.f32.mrb[3].mxu1 }
  0xee   : > { %v1320_v51 = vpop.f32.mrb[4].mxu0  ;;  %v1372_v52 = vpop.f32.mrb[4].mxu1 }
  0xef   : > { %v519_v37 = vpop.f32.mrb[5].mxu0  ;;  %v746_v53 = vpop.f32.mrb[5].mxu1 }
  0xf2   : > { %v1323_v38 = vpop.f32.mrb[6].mxu0  ;;  %v1375_v54 = vpop.f32.mrb[6].mxu1 }
  0xf3   : > { %v1846_v55 = vpop.f32.mrb[7].mxu0  ;;  %v1848_v56 = vpop.f32.mrb[7].mxu1 }
  0xf6   : > { %v1850_v41 = vpop.f32.mrb[8].mxu0  ;;  %v1852_v57 = vpop.f32.mrb[8].mxu1 }
  0xf7   : > { %v1854_v58 = vpop.f32.mrb[9].mxu0  ;;  %v1856_v59 = vpop.f32.mrb[9].mxu1 }
  0xfa   : > { %v1858_v60 = vpop.f32.mrb[10].mxu0  ;;  %v1860_v61 = vpop.f32.mrb[10].mxu1 }
  0xfb   : > { %v1862_v62 = vpop.f32.mrb[11].mxu0  ;;  %v1864_v63 = vpop.f32.mrb[11].mxu1 }
  0xfe   : > { %v1866_v0 = vpop.f32.mrb[12].mxu0  ;;  %v1868_v1 = vpop.f32.mrb[12].mxu1 }
  0xff   : > { %v1870_v2 = vpop.f32.mrb[13].mxu0  ;;  %v1872_v3 = vpop.f32.mrb[13].mxu1 }
 0x102   : > { %v1874_v4 = vpop.f32.mrb[14].mxu0  ;;  %v1876_v5 = vpop.f32.mrb[14].mxu1 }
 0x103   : > { %v1878_v6 = vpop.f32.mrb[15].mxu0  ;;  %v1880_v7 = vpop.f32.mrb[15].mxu1 }
 0x105   : > { %v919_v8 = vpop.permute.xlu0 %918 }
 0x106   : > { %vm1013_vm1 = vcmp.eq.s32.totalorder %v919_v8, 1  ;;  %v1889_v9 = vpop.f32.mrb[16].mxu0  ;;  %v1891_v10 = vpop.f32.mrb[16].mxu1 }
 0x107   : > { %v1045_v11 = vsel %vm1013_vm1, %v499_v45, %v726_v46  ;;  %v1893_v12 = vpop.f32.mrb[17].mxu0  ;;  %v1895_v13 = vpop.f32.mrb[17].mxu1 }
 0x108   : > { %1077 = vst [vmem:[%s1887_s30] sm:$0xff] %v1045_v11 }
 0x109   : > { %v922_v14 = vpop.permute.xlu1 %921  ;;  %v928_v15 = vpop.permute.xlu0 %927 }
 0x10a   : > { %vm1014_vm2 = vcmp.eq.s32.totalorder %v922_v14, 1  ;;  %vm1016_vm3 = vcmp.eq.s32.totalorder %v928_v15, 1  ;;  %v1898_v16 = vpop.f32.mrb[18].mxu0  ;;  %v1900_v17 = vpop.f32.mrb[18].mxu1 }
 0x10b   : > { %v1046_v18 = vsel %vm1014_vm2, %v1314_v36, %v1366_v44  ;;  %v1048_v19 = vsel %vm1016_vm3, %v1317_v47, %v1369_v48  ;;  %v1902_v20 = vpop.f32.mrb[19].mxu0  ;;  %v1904_v21 = vpop.f32.mrb[19].mxu1 }
 0x10c   : > { %1078 = vst [vmem:[%s1887_s30 + $0x8] sm:$0xff] %v1046_v18  ;;  %1080 = vst [vmem:[%s1887_s30 + $0x18] sm:$0xff] %v1048_v19 }
 0x10d   : > { %v925_v22 = vpop.permute.xlu1 %924  ;;  %v934_v23 = vpop.permute.xlu0 %933 }
 0x10e   : > { %vm1015_vm4 = vcmp.eq.s32.totalorder %v925_v22, 1  ;;  %vm1018_vm5 = vcmp.eq.s32.totalorder %v934_v23, 1  ;;  %v1908_v24 = vpop.f32.mrb[20].mxu0  ;;  %v1910_v25 = vpop.f32.mrb[20].mxu1 }
 0x10f   : > { %v1047_v26 = vsel %vm1015_vm4, %v509_v49, %v736_v50  ;;  %v1050_v27 = vsel %vm1018_vm5, %v1320_v51, %v1372_v52  ;;  %v1912_v28 = vpop.f32.mrb[21].mxu0  ;;  %v1914_v29 = vpop.f32.mrb[21].mxu1 }
 0x110   : > { %1079 = vst [vmem:[%s1887_s30 + $0x10] sm:$0xff] %v1047_v26  ;;  %1082 = vst [vmem:[%s1887_s30 + $0x28] sm:$0xff] %v1050_v27 }
 0x111   : > { %v931_v30 = vpop.permute.xlu1 %930  ;;  %v940_v39 = vpop.permute.xlu0 %939 }
 0x112   : > { %vm1017_vm6 = vcmp.eq.s32.totalorder %v931_v30, 1  ;;  %vm1020_vm7 = vcmp.eq.s32.totalorder %v940_v39, 1  ;;  %v1918_v31 = vpop.f32.mrb[22].mxu0  ;;  %v1920_v32 = vpop.f32.mrb[22].mxu1 }
 0x113   : > { %v1049_v40 = vsel %vm1017_vm6, %v519_v37, %v746_v53  ;;  %v1052_v42 = vsel %vm1020_vm7, %v1323_v38, %v1375_v54  ;;  %v1922_v33 = vpop.f32.mrb[23].mxu0  ;;  %v1924_v34 = vpop.f32.mrb[23].mxu1 }
 0x114   : > { %1081 = vst [vmem:[%s1887_s30 + $0x20] sm:$0xff] %v1049_v40  ;;  %1084 = vst [vmem:[%s1887_s30 + $0x38] sm:$0xff] %v1052_v42 }
 0x115   : > { %v937_v43 = vpop.permute.xlu1 %936  ;;  %v946_v35 = vpop.permute.xlu0 %945 }
 0x116   : > { %vm1019_vm8 = vcmp.eq.s32.totalorder %v937_v43, 1  ;;  %vm1022_vm9 = vcmp.eq.s32.totalorder %v946_v35, 1  ;;  %v1928_v36 = vpop.f32.mrb[24].mxu0  ;;  %v1930_v44 = vpop.f32.mrb[24].mxu1 }
 0x117   : > { %v1051_v45 = vsel %vm1019_vm8, %v1846_v55, %v1848_v56  ;;  %v1054_v46 = vsel %vm1022_vm9, %v1850_v41, %v1852_v57  ;;  %v1936_v47 = vpop.f32.mrb[25].mxu0  ;;  %v1938_v48 = vpop.f32.mrb[25].mxu1 }
 0x118   : > { %1083 = vst [vmem:[%s1887_s30 + $0x30] sm:$0xff] %v1051_v45  ;;  %1086 = vst [vmem:[%s1887_s30 + $0x48] sm:$0xff] %v1054_v46 }
 0x119   : > { %v943_v49 = vpop.permute.xlu1 %942  ;;  %v952_v50 = vpop.permute.xlu0 %951 }
 0x11a   : > { %vm1021_vm10 = vcmp.eq.s32.totalorder %v943_v49, 1  ;;  %vm1024_vm11 = vcmp.eq.s32.totalorder %v952_v50, 1  ;;  %v1942_v51 = vpop.f32.mrb[26].mxu0  ;;  %v1944_v52 = vpop.f32.mrb[26].mxu1 }
 0x11b   : > { %v1053_v37 = vsel %vm1021_vm10, %v1854_v58, %v1856_v59  ;;  %v1056_v53 = vsel %vm1024_vm11, %v1858_v60, %v1860_v61  ;;  %v1950_v38 = vpop.f32.mrb[27].mxu0  ;;  %v1952_v54 = vpop.f32.mrb[27].mxu1 }
 0x11c   : > { %1085 = vst [vmem:[%s1887_s30 + $0x40] sm:$0xff] %v1053_v37  ;;  %1088 = vst [vmem:[%s1887_s30 + $0x58] sm:$0xff] %v1056_v53 }
 0x11d   : > { %v949_v55 = vpop.permute.xlu1 %948  ;;  %v958_v56 = vpop.permute.xlu0 %957 }
 0x11e   : > { %vm1023_vm12 = vcmp.eq.s32.totalorder %v949_v55, 1  ;;  %vm1026_vm13 = vcmp.eq.s32.totalorder %v958_v56, 1  ;;  %v1956_v41 = vpop.f32.mrb[28].mxu0  ;;  %v1958_v57 = vpop.f32.mrb[28].mxu1 }
 0x11f   : > { %v1055_v58 = vsel %vm1023_vm12, %v1862_v62, %v1864_v63  ;;  %v1058_v59 = vsel %vm1026_vm13, %v1866_v0, %v1868_v1  ;;  %v1964_v60 = vpop.f32.mrb[29].mxu0  ;;  %v1966_v61 = vpop.f32.mrb[29].mxu1 }
 0x120   : > { %1087 = vst [vmem:[%s1887_s30 + $0x50] sm:$0xff] %v1055_v58  ;;  %1090 = vst [vmem:[%s1887_s30 + $0x68] sm:$0xff] %v1058_v59 }
 0x121   : > { %v955_v8 = vpop.permute.xlu1 %954  ;;  %v964_v11 = vpop.permute.xlu0 %963 }
 0x122   : > { %vm1025_vm14 = vcmp.eq.s32.totalorder %v955_v8, 1  ;;  %vm1028_vm15 = vcmp.eq.s32.totalorder %v964_v11, 1  ;;  %v1970_v14 = vpop.f32.mrb[30].mxu0  ;;  %v1972_v62 = vpop.f32.mrb[30].mxu1 }
 0x123   : > { %v1057_v63 = vsel %vm1025_vm14, %v1870_v2, %v1872_v3  ;;  %v1060_v0 = vsel %vm1028_vm15, %v1874_v4, %v1876_v5  ;;  %v1978_v1 = vpop.f32.mrb[31].mxu0  ;;  %v1980_v15 = vpop.f32.mrb[31].mxu1 }
 0x124   : > { %1089 = vst [vmem:[%s1887_s30 + $0x60] sm:$0xff] %v1057_v63  ;;  %1092 = vst [vmem:[%s1887_s30 + $0x78] sm:$0xff] %v1060_v0 }
 0x125   : > { %v961_v18 = vpop.permute.xlu1 %960  ;;  %v970_v19 = vpop.permute.xlu0 %969 }
 0x126   : > { %vm1027_vm0 = vcmp.eq.s32.totalorder %v961_v18, 1  ;;  %vm1030_vm1 = vcmp.eq.s32.totalorder %v970_v19, 1 }
 0x127   : > { %v1059_v22 = vsel %vm1027_vm0, %v1878_v6, %v1880_v7  ;;  %v1062_v2 = vsel %vm1030_vm1, %v1889_v9, %v1891_v10 }
 0x128   : > { %1091 = vst [vmem:[%s1887_s30 + $0x70] sm:$0xff] %v1059_v22  ;;  %1094 = vst [vmem:[%s1887_s30 + $0x88] sm:$0xff] %v1062_v2 }
 0x129   : > { %v967_v3 = vpop.permute.xlu1 %966  ;;  %v976_v4 = vpop.permute.xlu0 %975 }
 0x12a   : > { %vm1029_vm2 = vcmp.eq.s32.totalorder %v967_v3, 1  ;;  %vm1032_vm3 = vcmp.eq.s32.totalorder %v976_v4, 1 }
 0x12b   : > { %v1061_v5 = vsel %vm1029_vm2, %v1893_v12, %v1895_v13  ;;  %v1064_v23 = vsel %vm1032_vm3, %v1898_v16, %v1900_v17 }
 0x12c   : > { %1093 = vst [vmem:[%s1887_s30 + $0x80] sm:$0xff] %v1061_v5  ;;  %1096 = vst [vmem:[%s1887_s30 + $0x98] sm:$0xff] %v1064_v23 }
 0x12d   : > { %v973_v6 = vpop.permute.xlu1 %972  ;;  %v982_v7 = vpop.permute.xlu0 %981 }
 0x12e   : > { %vm1031_vm4 = vcmp.eq.s32.totalorder %v973_v6, 1  ;;  %vm1034_vm5 = vcmp.eq.s32.totalorder %v982_v7, 1 }
 0x12f   : > { %v1063_v9 = vsel %vm1031_vm4, %v1902_v20, %v1904_v21  ;;  %v1066_v10 = vsel %vm1034_vm5, %v1908_v24, %v1910_v25 }
 0x130   : > { %1095 = vst [vmem:[%s1887_s30 + $0x90] sm:$0xff] %v1063_v9  ;;  %1098 = vst [vmem:[%s1887_s30 + $0xa8] sm:$0xff] %v1066_v10 }
 0x131   : > { %v979_v12 = vpop.permute.xlu1 %978  ;;  %v988_v13 = vpop.permute.xlu0 %987 }
 0x132   : > { %vm1033_vm6 = vcmp.eq.s32.totalorder %v979_v12, 1  ;;  %vm1036_vm7 = vcmp.eq.s32.totalorder %v988_v13, 1 }
 0x133   : > { %v1065_v16 = vsel %vm1033_vm6, %v1912_v28, %v1914_v29  ;;  %v1068_v17 = vsel %vm1036_vm7, %v1918_v31, %v1920_v32 }
 0x134   : > { %1097 = vst [vmem:[%s1887_s30 + $0xa0] sm:$0xff] %v1065_v16  ;;  %1100 = vst [vmem:[%s1887_s30 + $0xb8] sm:$0xff] %v1068_v17 }
 0x135   : > { %v985_v20 = vpop.permute.xlu1 %984  ;;  %v994_v21 = vpop.permute.xlu0 %993 }
 0x136   : > { %vm1035_vm8 = vcmp.eq.s32.totalorder %v985_v20, 1  ;;  %vm1038_vm9 = vcmp.eq.s32.totalorder %v994_v21, 1 }
 0x137   : > { %v1067_v24 = vsel %vm1035_vm8, %v1922_v33, %v1924_v34  ;;  %v1070_v25 = vsel %vm1038_vm9, %v1928_v36, %v1930_v44 }
 0x138   : > { %1099 = vst [vmem:[%s1887_s30 + $0xb0] sm:$0xff] %v1067_v24  ;;  %1102 = vst [vmem:[%s1887_s30 + $0xc8] sm:$0xff] %v1070_v25 }
 0x139   : > { %v991_v26 = vpop.permute.xlu1 %990  ;;  %v1000_v27 = vpop.permute.xlu0 %999 }
 0x13a   : > { %vm1037_vm10 = vcmp.eq.s32.totalorder %v991_v26, 1  ;;  %vm1040_vm11 = vcmp.eq.s32.totalorder %v1000_v27, 1 }
 0x13b   : > { %v1069_v28 = vsel %vm1037_vm10, %v1936_v47, %v1938_v48  ;;  %v1072_v29 = vsel %vm1040_vm11, %v1942_v51, %v1944_v52 }
 0x13c   : > { %1101 = vst [vmem:[%s1887_s30 + $0xc0] sm:$0xff] %v1069_v28  ;;  %1104 = vst [vmem:[%s1887_s30 + $0xd8] sm:$0xff] %v1072_v29 }
 0x13d   : > { %v997_v30 = vpop.permute.xlu1 %996  ;;  %v1006_v39 = vpop.permute.xlu0 %1005 }
 0x13e   : > { %vm1039_vm12 = vcmp.eq.s32.totalorder %v997_v30, 1  ;;  %vm1042_vm13 = vcmp.eq.s32.totalorder %v1006_v39, 1 }
 0x13f   : > { %v1071_v31 = vsel %vm1039_vm12, %v1950_v38, %v1952_v54  ;;  %v1074_v32 = vsel %vm1042_vm13, %v1956_v41, %v1958_v57 }
 0x140   : > { %1103 = vst [vmem:[%s1887_s30 + $0xd0] sm:$0xff] %v1071_v31  ;;  %1106 = vst [vmem:[%s1887_s30 + $0xe8] sm:$0xff] %v1074_v32 }
 0x141   : > { %v1003_v40 = vpop.permute.xlu1 %1002  ;;  %v1012_v42 = vpop.permute.xlu0 %1011 }
 0x142   : > { %vm1041_vm14 = vcmp.eq.s32.totalorder %v1003_v40, 1  ;;  %vm1044_vm15 = vcmp.eq.s32.totalorder %v1012_v42, 1 }
 0x143   : > { %v1073_v33 = vsel %vm1041_vm14, %v1964_v60, %v1966_v61  ;;  %v1076_v34 = vsel %vm1044_vm15, %v1970_v14, %v1972_v62 }
 0x144   : > { %1105 = vst [vmem:[%s1887_s30 + $0xe0] sm:$0xff] %v1073_v33  ;;  %1108 = vst [vmem:[%s1887_s30 + $0xf8] sm:$0xff] %v1076_v34 }
 0x145   : > { %v1009_v43 = vpop.permute.xlu1 %1008 }
 0x146   : > { %vm1043_vm0 = vcmp.eq.s32.totalorder %v1009_v43, 1 }
 0x147   : > { %v1075_v35 = vsel %vm1043_vm0, %v1978_v1, %v1980_v15 }
 0x148   : > { %1107 = vst [vmem:[%s1887_s30 + $0xf0] sm:$0xff] %v1075_v35 }
 0x149 PF: > { %s13_s12 = sadd.s32 1, %s1439_s12  }
 0x14a   : > { %p10_p4 = scmp.ge.s32.totalorder %s13_s12, 6  }
 0x14c   :  { %12 = sbr.rel (!%p10_p4) target bundleno = 1 (0x1), region = 62 }

</bundles_post_ra>
